<compile_context>
chip_gen: v6e
topology: v6e:2x2x1
jax: 0.10.0
libtpu: 0.0.40
codegen_flags: <defaults>
</compile_context>

<pallas_src>
import math

import jax
import jax.numpy as jnp
from jax.experimental import pallas as pl
from jax.experimental.pallas import tpu as pltpu

_SQRT_2_OVER_PI = math.sqrt(2.0 / math.pi)
_I_PAD_MULTIPLE = 512


def _gelu_tanh(x):
    # torch.nn.functional.gelu(x, approximate='tanh'); computed in f32.
    return 0.5 * x * (1.0 + jnp.tanh(_SQRT_2_OVER_PI * (x + 0.044715 * x * x * x)))


def _round_up(x, m):
    return ((x + m - 1) // m) * m


# ----------------------------------------------------------------------------
# Kernel
# ----------------------------------------------------------------------------
def _mlp_kernel(x_ref, w1_ref, b1_ref, w2_ref, b2_ref, o_ref, acc_ref):
    # Grid: (rows, k) with k running over tiles of the (padded) intermediate dim.
    #   x_ref:  (tm, H)    row tile of hidden_states (same block for every k)
    #   w1_ref: (H, ti)    k-th column slab of W1^T
    #   b1_ref: (1, ti)    k-th slice of b1
    #   w2_ref: (ti, H)    k-th row slab of W2^T
    #   b2_ref: (1, H)     full b2 (used only in the finalize branch)
    #   acc_ref:(tm, H)    f32 accumulator, resident across k
    k = pl.program_id(1)

    @pl.when(k == 0)
    def _():
        acc_ref[...] = jnp.zeros_like(acc_ref)

    x = x_ref[...]
    ti = w1_ref.shape[1]
    # Split the I-tile into two halves (statically unrolled) so matmul2 on one
    # half overlaps bias+GELU (VPU/EUP) on the other half.
    n_sub = 2 if (ti % 256 == 0) else 1
    sub = ti // n_sub

    partial = None
    for s in range(n_sub):
        lo = s * sub
        h = jnp.dot(x, w1_ref[:, lo:lo + sub], preferred_element_type=jnp.float32)
        g = _gelu_tanh(h + b1_ref[:, lo:lo + sub].astype(jnp.float32))
        d = jnp.dot(g.astype(w2_ref.dtype), w2_ref[lo:lo + sub, :],
                    preferred_element_type=jnp.float32)
        partial = d if partial is None else partial + d

    acc_ref[...] += partial

    @pl.when(k == pl.num_programs(1) - 1)
    def _():
        # b2 added exactly once; single lane-dense output store per row tile.
        o_ref[...] = (acc_ref[...] + b2_ref[...].astype(jnp.float32)).astype(o_ref.dtype)


# ----------------------------------------------------------------------------
# One-time (model-load) weight preparation
# ----------------------------------------------------------------------------
def prepare_flash_mlp_params(w1, b1, w2, b2, compute_dtype=jnp.bfloat16):
    """Transpose PyTorch-layout Linear weights to (in, out), make biases 2-D,
    zero-pad the intermediate dim to a multiple of 512 (so a lane-aligned tile
    size always divides it), and cast to the compute dtype (bf16 by default)."""
    w1 = jnp.asarray(w1)
    b1 = jnp.asarray(b1)
    w2 = jnp.asarray(w2)
    b2 = jnp.asarray(b2)

    I, H = w1.shape
    I_pad = _round_up(I, _I_PAD_MULTIPLE)

    w1_t = w1.T                      # (H, I)
    w2_t = w2.T                      # (I, H)
    b1_2d = b1.reshape(1, I)
    b2_2d = b2.reshape(1, H)

    if I_pad != I:
        # Zero padding is exact: gelu(x@0 + 0) == 0, so padded columns add 0.
        w1_t = jnp.pad(w1_t, ((0, 0), (0, I_pad - I)))
        b1_2d = jnp.pad(b1_2d, ((0, 0), (0, I_pad - I)))
        w2_t = jnp.pad(w2_t, ((0, I_pad - I), (0, 0)))

    if compute_dtype is not None:
        w1_t = w1_t.astype(compute_dtype)
        w2_t = w2_t.astype(compute_dtype)
        b1_2d = b1_2d.astype(compute_dtype)
        b2_2d = b2_2d.astype(compute_dtype)
    return w1_t, b1_2d, w2_t, b2_2d


# ----------------------------------------------------------------------------
# VMEM-budget-aware tile selection
# ----------------------------------------------------------------------------
def _vmem_capacity_bytes():
    try:
        info = pltpu.get_tpu_info()
        cap = int(getattr(info, "vmem_capacity_bytes", 0))
        if cap > 0:
            return cap
    except Exception:
        pass
    try:
        kind = jax.devices()[0].device_kind.lower()
        if "v7" in kind:
            return 64 << 20
    except Exception:
        pass
    return 128 << 20


def _select_tiles(S, H, I_pad, xb, wb, ob, budget, tm_req=None, ti_req=None):
    def footprint(tm, ti):
        weights = 2 * (H * ti + ti * H + ti + H) * wb   # W1/W2 slabs + biases, double-buffered
        io = 2 * tm * H * (xb + ob)                     # x and output tiles, double-buffered
        acc = tm * H * 4                                 # f32 accumulator scratch
        tmp = tm * ti * (4 + wb)                         # in-kernel f32 h + bf16 cast (conservative)
        return weights + io + acc + tmp

    row_cap = max(8, _round_up(S, 8))
    tm_cands = [t for t in (1024, 768, 512, 384, 256, 128, 64, 32, 16, 8) if t <= row_cap]
    if not tm_cands:
        tm_cands = [row_cap]
    if tm_req is not None:
        tm_cands = [_round_up(min(tm_req, row_cap), 8)]

    ti_cands = [t for t in (2048, 1024, 512, 256, 128) if t <= I_pad and I_pad % t == 0]
    if not ti_cands:
        cand = min(2048, I_pad) - (min(2048, I_pad) % 128)
        while cand >= 128 and I_pad % cand != 0:
            cand -= 128
        ti_cands = [cand if cand >= 128 else I_pad]
    if ti_req is not None:
        ti_cands = [t for t in ti_cands if t <= ti_req] or ti_cands[-1:]

    # Prefer the largest row tile (weights are re-streamed once per row tile ->
    # arithmetic intensity ~ tm), then the largest I-tile (fewer grid steps,
    # less accumulator RMW).  First pass keeps ti >= 512 to bound step overhead.
    for min_ti in (min(512, max(ti_cands)), 0):
        for tm in tm_cands:
            for ti in ti_cands:
                if ti < min_ti:
                    continue
                if footprint(tm, ti) <= budget:
                    return tm, ti
    return tm_cands[-1], ti_cands[-1]


# ----------------------------------------------------------------------------
# Forward wrapper
# ----------------------------------------------------------------------------
def flash_mlp(hidden_states, params, *, tm=None, ti=None):
    """hidden_states: [S, H]; params from prepare_flash_mlp_params."""
    w1_t, b1_2d, w2_t, b2_2d = params
    S, H = hidden_states.shape
    I_pad = w1_t.shape[1]
    out_dtype = hidden_states.dtype
    compute_dtype = w1_t.dtype

    x = hidden_states
    if x.dtype != compute_dtype:
        x = x.astype(compute_dtype)

    cap = _vmem_capacity_bytes()
    budget = int(cap * 0.85)
    xb = jnp.dtype(compute_dtype).itemsize
    wb = jnp.dtype(compute_dtype).itemsize
    ob = jnp.dtype(out_dtype).itemsize
    tm_eff, ti_eff = _select_tiles(S, H, I_pad, xb, wb, ob, budget, tm, ti)

    # No padding of x: partial last row tile holds don't-care rows (math is
    # row-independent; out-of-bounds output rows are clipped on writeback).
    grid = (pl.cdiv(S, tm_eff), I_pad // ti_eff)

    out = pl.pallas_call(
        _mlp_kernel,
        out_shape=jax.ShapeDtypeStruct((S, H), out_dtype),
        grid_spec=pltpu.PrefetchScalarGridSpec(
            num_scalar_prefetch=0,
            grid=grid,
            in_specs=[
                pl.BlockSpec((tm_eff, H), lambda i, k: (i, 0)),   # x row tile
                pl.BlockSpec((H, ti_eff), lambda i, k: (0, k)),   # W1^T slab
                pl.BlockSpec((1, ti_eff), lambda i, k: (0, k)),   # b1 slice
                pl.BlockSpec((ti_eff, H), lambda i, k: (k, 0)),   # W2^T slab
                pl.BlockSpec((1, H), lambda i, k: (0, 0)),        # b2 (full)
            ],
            out_specs=pl.BlockSpec((tm_eff, H), lambda i, k: (i, 0)),
            scratch_shapes=[pltpu.VMEM((tm_eff, H), jnp.float32)],
        ),
        compiler_params=pltpu.CompilerParams(
            dimension_semantics=("parallel", "arbitrary"),
            vmem_limit_bytes=int(cap * 0.9),
        ),
    )(x, w1_t, b1_2d, w2_t, b2_2d)
    return out


# ----------------------------------------------------------------------------
# Reference + self-test
# ----------------------------------------------------------------------------
def _reference(hidden_states, w1, b1, w2, b2):
    h = hidden_states @ w1.T + b1
    h = _gelu_tanh(h)
    return h @ w2.T + b2


if __name__ == "__main__":
    # Small shapes consistent with the module: seq=16, hidden=32, intermediate=4*hidden.
    S, H = 16, 32
    I = 4 * H

    key = jax.random.PRNGKey(0)
    k_x, k_w1, k_b1, k_w2, k_b2 = jax.random.split(key, 5)

    x = jax.random.normal(k_x, (S, H), dtype=jnp.float32)
    # "FastLinear" parameters in PyTorch layout: weight (out, in), bias (out,).
    w1 = jax.random.normal(k_w1, (I, H), dtype=jnp.float32) * 0.05
    b1 = jax.random.normal(k_b1, (I,), dtype=jnp.float32) * 0.05
    w2 = jax.random.normal(k_w2, (H, I), dtype=jnp.float32) * 0.05
    b2 = jax.random.normal(k_b2, (H,), dtype=jnp.float32) * 0.05

    ref = _reference(x, w1, b1, w2, b2)

    # f32 compute path: bit-accurate check vs reference.
    params_f32 = prepare_flash_mlp_params(w1, b1, w2, b2, compute_dtype=jnp.float32)
    out_f32 = jax.block_until_ready(flash_mlp(x, params_f32))
    assert out_f32.shape == (S, H)
    assert jnp.allclose(out_f32, ref, atol=1e-5, rtol=1e-5), "f32 mismatch vs reference"

    # Ragged sequence length (exercises the cdiv grid / partial row tile path).
    S2 = 13
    x2 = x[:S2]
    out_rag = jax.block_until_ready(flash_mlp(x2, params_f32))
    assert out_rag.shape == (S2, H)
    assert jnp.allclose(out_rag, ref[:S2], atol=1e-5, rtol=1e-5), "ragged mismatch"

    # Default production path: bf16 weights/activations, f32 accumulation/GELU.
    params_bf16 = prepare_flash_mlp_params(w1, b1, w2, b2)
    out_bf16 = jax.block_until_ready(flash_mlp(x, params_bf16))
    assert out_bf16.shape == (S, H)
    assert jnp.allclose(out_bf16.astype(jnp.float32), ref, atol=3e-2, rtol=5e-2), \
        "bf16 mismatch vs reference"

    print("KERNEL_OK")
</pallas_src>

<mosaic_0001>
module attributes {stable_mosaic.version = 11 : i64} {
  func.func @_mlp_kernel(%arg0: i32, %arg1: i32, %arg2: memref<16x32xf32, #tpu.memory_space<vmem>>, %arg3: memref<32x512xf32, #tpu.memory_space<vmem>>, %arg4: memref<1x512xf32, #tpu.memory_space<vmem>>, %arg5: memref<512x32xf32, #tpu.memory_space<vmem>>, %arg6: memref<1x32xf32, #tpu.memory_space<vmem>>, %arg7: memref<16x32xf32, #tpu.memory_space<vmem>>, %arg8: memref<16x32xf32, #tpu.memory_space<vmem>>) attributes {dimension_semantics = [#tpu.dimension_semantics<parallel>, #tpu.dimension_semantics<arbitrary>], iteration_bounds = array<i64: 1, 1>, scalar_prefetch = 0 : i64, scratch_operands = 1 : i64, tpu.core_type = #tpu.core_type<tc>, window_params = [{transform_indices = @transform_0, window_bounds = array<i64: 16, 32>}, {transform_indices = @transform_1, window_bounds = array<i64: 32, 512>}, {transform_indices = @transform_2, window_bounds = array<i64: 1, 512>}, {transform_indices = @transform_3, window_bounds = array<i64: 512, 32>}, {pipeline_mode = #tpu.pipeline_mode<synchronous>, transform_indices = @transform_4, window_bounds = array<i64: 1, 32>}, {transform_indices = @transform_5, window_bounds = array<i64: 16, 32>}]} {
    %c0_i32 = arith.constant 0 : i32
    %0 = arith.cmpi eq, %arg1, %c0_i32 : i32
    %1 = arith.extui %0 : i1 to i32
    %c0_i32_0 = arith.constant 0 : i32
    %2 = arith.cmpi ne, %1, %c0_i32_0 : i32
    scf.if %2 {
      %cst_30 = arith.constant 0.000000e+00 : f32
      %51 = vector.broadcast %cst_30 : f32 to vector<16x32xf32>
      %c0_31 = arith.constant 0 : index
      %c0_32 = arith.constant 0 : index
      %52 = vector.load %arg8[%c0_31, %c0_32] : memref<16x32xf32, #tpu.memory_space<vmem>>, vector<16x32xf32>
      tpu.vector_store %arg8[%c0_31, %c0_32], %51 {strides = array<i32>} : memref<16x32xf32, #tpu.memory_space<vmem>>, vector<16x32xf32>,
    } else {
    }
    %c0 = arith.constant 0 : index
    %c0_1 = arith.constant 0 : index
    %3 = vector.load %arg2[%c0, %c0_1] : memref<16x32xf32, #tpu.memory_space<vmem>>, vector<16x32xf32>
    %c0_2 = arith.constant 0 : index
    %c0_3 = arith.constant 0 : index
    %4 = vector.load %arg3[%c0_2, %c0_3] : memref<32x512xf32, #tpu.memory_space<vmem>>, vector<32x256xf32>
    %cst = arith.constant dense<0.000000e+00> : vector<16x256xf32>
    %5 = tpu.matmul %3, %4, %cst {dimension_numbers = #tpu.dot_dimension_numbers<[1], [0], [0], [1], [0, 0, 1, 1], [], []>} : vector<16x32xf32>, vector<32x256xf32>, vector<16x256xf32> -> vector<16x256xf32>
    %c0_4 = arith.constant 0 : index
    %c0_5 = arith.constant 0 : index
    %6 = vector.load %arg4[%c0_4, %c0_5] : memref<1x512xf32, #tpu.memory_space<vmem>>, vector<1x256xf32>
    %7 = vector.broadcast %6 : vector<1x256xf32> to vector<16x256xf32>
    %8 = arith.addf %5, %7 : vector<16x256xf32>
    %cst_6 = arith.constant 5.000000e-01 : f32
    %9 = vector.broadcast %cst_6 : f32 to vector<16x256xf32>
    %10 = arith.mulf %9, %8 : vector<16x256xf32>
    %cst_7 = arith.constant 4.471500e-02 : f32
    %11 = vector.broadcast %cst_7 : f32 to vector<16x256xf32>
    %12 = arith.mulf %11, %8 : vector<16x256xf32>
    %13 = arith.mulf %12, %8 : vector<16x256xf32>
    %14 = arith.mulf %13, %8 : vector<16x256xf32>
    %15 = arith.addf %8, %14 : vector<16x256xf32>
    %cst_8 = arith.constant 0.797884583 : f32
    %16 = vector.broadcast %cst_8 : f32 to vector<16x256xf32>
    %17 = arith.mulf %16, %15 : vector<16x256xf32>
    %18 = math.tanh %17 : vector<16x256xf32>
    %cst_9 = arith.constant 1.000000e+00 : f32
    %19 = vector.broadcast %cst_9 : f32 to vector<16x256xf32>
    %20 = arith.addf %19, %18 : vector<16x256xf32>
    %21 = arith.mulf %10, %20 : vector<16x256xf32>
    %c0_10 = arith.constant 0 : index
    %c0_11 = arith.constant 0 : index
    %22 = vector.load %arg5[%c0_10, %c0_11] : memref<512x32xf32, #tpu.memory_space<vmem>>, vector<256x32xf32>
    %cst_12 = arith.constant dense<0.000000e+00> : vector<16x32xf32>
    %23 = tpu.matmul %21, %22, %cst_12 {dimension_numbers = #tpu.dot_dimension_numbers<[1], [0], [0], [1], [0, 0, 1, 1], [], []>} : vector<16x256xf32>, vector<256x32xf32>, vector<16x32xf32> -> vector<16x32xf32>
    %c0_13 = arith.constant 0 : index
    %c256 = arith.constant 256 : index
    %24 = vector.load %arg3[%c0_13, %c256] : memref<32x512xf32, #tpu.memory_space<vmem>>, vector<32x256xf32>
    %cst_14 = arith.constant dense<0.000000e+00> : vector<16x256xf32>
    %25 = tpu.matmul %3, %24, %cst_14 {dimension_numbers = #tpu.dot_dimension_numbers<[1], [0], [0], [1], [0, 0, 1, 1], [], []>} : vector<16x32xf32>, vector<32x256xf32>, vector<16x256xf32> -> vector<16x256xf32>
    %c0_15 = arith.constant 0 : index
    %c256_16 = arith.constant 256 : index
    %26 = vector.load %arg4[%c0_15, %c256_16] : memref<1x512xf32, #tpu.memory_space<vmem>>, vector<1x256xf32>
    %27 = vector.broadcast %26 : vector<1x256xf32> to vector<16x256xf32>
    %28 = arith.addf %25, %27 : vector<16x256xf32>
    %cst_17 = arith.constant 5.000000e-01 : f32
    %29 = vector.broadcast %cst_17 : f32 to vector<16x256xf32>
    %30 = arith.mulf %29, %28 : vector<16x256xf32>
    %cst_18 = arith.constant 4.471500e-02 : f32
    %31 = vector.broadcast %cst_18 : f32 to vector<16x256xf32>
    %32 = arith.mulf %31, %28 : vector<16x256xf32>
    %33 = arith.mulf %32, %28 : vector<16x256xf32>
    %34 = arith.mulf %33, %28 : vector<16x256xf32>
    %35 = arith.addf %28, %34 : vector<16x256xf32>
    %cst_19 = arith.constant 0.797884583 : f32
    %36 = vector.broadcast %cst_19 : f32 to vector<16x256xf32>
    %37 = arith.mulf %36, %35 : vector<16x256xf32>
    %38 = math.tanh %37 : vector<16x256xf32>
    %cst_20 = arith.constant 1.000000e+00 : f32
    %39 = vector.broadcast %cst_20 : f32 to vector<16x256xf32>
    %40 = arith.addf %39, %38 : vector<16x256xf32>
    %41 = arith.mulf %30, %40 : vector<16x256xf32>
    %c256_21 = arith.constant 256 : index
    %c0_22 = arith.constant 0 : index
    %42 = vector.load %arg5[%c256_21, %c0_22] : memref<512x32xf32, #tpu.memory_space<vmem>>, vector<256x32xf32>
    %cst_23 = arith.constant dense<0.000000e+00> : vector<16x32xf32>
    %43 = tpu.matmul %41, %42, %cst_23 {dimension_numbers = #tpu.dot_dimension_numbers<[1], [0], [0], [1], [0, 0, 1, 1], [], []>} : vector<16x256xf32>, vector<256x32xf32>, vector<16x32xf32> -> vector<16x32xf32>
    %44 = arith.addf %23, %43 : vector<16x32xf32>
    %c0_24 = arith.constant 0 : index
    %c0_25 = arith.constant 0 : index
    %45 = vector.load %arg8[%c0_24, %c0_25] : memref<16x32xf32, #tpu.memory_space<vmem>>, vector<16x32xf32>
    %46 = arith.addf %45, %44 : vector<16x32xf32>
    %c0_26 = arith.constant 0 : index
    %c0_27 = arith.constant 0 : index
    %47 = vector.load %arg8[%c0_26, %c0_27] : memref<16x32xf32, #tpu.memory_space<vmem>>, vector<16x32xf32>
    tpu.vector_store %arg8[%c0_26, %c0_27], %46 {strides = array<i32>} : memref<16x32xf32, #tpu.memory_space<vmem>>, vector<16x32xf32>,
    %c0_i32_28 = arith.constant 0 : i32
    %48 = arith.cmpi eq, %arg1, %c0_i32_28 : i32
    %49 = arith.extui %48 : i1 to i32
    %c0_i32_29 = arith.constant 0 : i32
    %50 = arith.cmpi ne, %49, %c0_i32_29 : i32
    scf.if %50 {
      %c0_30 = arith.constant 0 : index
      %c0_31 = arith.constant 0 : index
      %51 = vector.load %arg8[%c0_30, %c0_31] : memref<16x32xf32, #tpu.memory_space<vmem>>, vector<16x32xf32>
      %c0_32 = arith.constant 0 : index
      %c0_33 = arith.constant 0 : index
      %52 = vector.load %arg6[%c0_32, %c0_33] : memref<1x32xf32, #tpu.memory_space<vmem>>, vector<1x32xf32>
      %53 = vector.broadcast %52 : vector<1x32xf32> to vector<16x32xf32>
      %54 = arith.addf %51, %53 : vector<16x32xf32>
      %c0_34 = arith.constant 0 : index
      %c0_35 = arith.constant 0 : index
      %55 = vector.load %arg7[%c0_34, %c0_35] : memref<16x32xf32, #tpu.memory_space<vmem>>, vector<16x32xf32>
      tpu.vector_store %arg7[%c0_34, %c0_35], %54 {strides = array<i32>} : memref<16x32xf32, #tpu.memory_space<vmem>>, vector<16x32xf32>,
    } else {
    }
    return
  }
  func.func @transform_0(%arg0: i32, %arg1: i32) -> (i32, i32) {
    %c0_i32 = arith.constant 0 : i32
    %c0_i32_0 = arith.constant 0 : i32
    return %arg0, %c0_i32 : i32, i32
  }
  func.func @transform_1(%arg0: i32, %arg1: i32) -> (i32, i32) {
    %c0_i32 = arith.constant 0 : i32
    %c0_i32_0 = arith.constant 0 : i32
    return %c0_i32, %arg1 : i32, i32
  }
  func.func @transform_2(%arg0: i32, %arg1: i32) -> (i32, i32) {
    %c0_i32 = arith.constant 0 : i32
    %c0_i32_0 = arith.constant 0 : i32
    return %c0_i32, %arg1 : i32, i32
  }
  func.func @transform_3(%arg0: i32, %arg1: i32) -> (i32, i32) {
    %c0_i32 = arith.constant 0 : i32
    %c0_i32_0 = arith.constant 0 : i32
    return %arg1, %c0_i32 : i32, i32
  }
  func.func @transform_4(%arg0: i32, %arg1: i32) -> (i32, i32) {
    %c0_i32 = arith.constant 0 : i32
    %c0_i32_0 = arith.constant 0 : i32
    %c0_i32_1 = arith.constant 0 : i32
    return %c0_i32, %c0_i32_0 : i32, i32
  }
  func.func @transform_5(%arg0: i32, %arg1: i32) -> (i32, i32) {
    %c0_i32 = arith.constant 0 : i32
    %c0_i32_0 = arith.constant 0 : i32
    return %arg0, %c0_i32 : i32, i32
  }
}

</mosaic_0001>

<bundles_post_ra>
// kernel: tpu_custom_call.1
= control target key start
LH: loop header
LB: loop body
LE: loop exit
PB: predicated region body
PF: predicated region fallthrough
CT: control target
= control target key end

     0   :  { %vm25_vm0 = vcmask 261120   ;;  %v678_v6 = vmov 0.0   ;;  %s1022_s0 = inlined_call_operand.vmem [shape: f32[16,32], index: 0, kind: input, shape index: {}]   ;;  %s1023_s1 = inlined_call_operand.vmem [shape: f32[32,512], index: 1, kind: input, shape index: {}]   ;;  %s1024_s2 = inlined_call_operand.vmem [shape: f32[1,512], index: 2, kind: input, shape index: {}]   ;;  %s1025_s3 = inlined_call_operand.vmem [shape: f32[512,32], index: 3, kind: input, shape index: {}]   ;;  %s1026_s4 = inlined_call_operand.vmem [shape: f32[1,32], index: 4, kind: input, shape index: {}]   ;;  %s1027_s5 = inlined_call_operand.hbm [shape: f32[16,32], index: 5, kind: output, shape index: {}]  }
   0x1   :  { %v37_v0 = vld [vmem:[%s1023_s1 + $0x68] sm:$0xff]  ;;  %v209_v1 = vld [vmem:[%s1023_s1 + $0x78] sm:$0xff]  ;;  %v36_v2 = vld [vmem:[%s1023_s1 + $0x60] sm:$0xff]  ;;  %26 = vst.msk [vmem:[#allocation2] sm:$0xff] %vm25_vm0, %v678_v6 }
   0x2   :  { %81 = vmatprep.subr.mxu0 %v37_v0  ;;  %246 = vmatprep.subr.mxu1 %v209_v1  ;;  %v208_v3 = vld [vmem:[%s1023_s1 + $0x70] sm:$0xff]  ;;  %v35_v4 = vld [vmem:[%s1023_s1 + $0x48] sm:$0xff]  ;;  %v207_v5 = vld [vmem:[%s1023_s1 + $0x58] sm:$0xff]  ;;  %27 = vst.msk [vmem:[#allocation2 + $0x8] sm:$0xff] %vm25_vm0, %v678_v6 }
   0x3   :  { %82 = vmatpush1.msra.mxu0 %v36_v2  ;;  %247 = vmatpush1.msra.mxu1 %v208_v3  ;;  %v34_v7 = vld [vmem:[%s1023_s1 + $0x40] sm:$0xff]  ;;  %v206_v8 = vld [vmem:[%s1023_s1 + $0x50] sm:$0xff]  ;;  %v33_v9 = vld [vmem:[%s1023_s1 + $0x28] sm:$0xff] }
   0x4   :  { %83 = vmatprep.subr.mxu0 %v35_v4  ;;  %248 = vmatprep.subr.mxu1 %v207_v5  ;;  %v205_v10 = vld [vmem:[%s1023_s1 + $0x38] sm:$0xff]  ;;  %v32_v11 = vld [vmem:[%s1023_s1 + $0x20] sm:$0xff]  ;;  %v204_v12 = vld [vmem:[%s1023_s1 + $0x30] sm:$0xff] }
   0x5   :  { %84 = vmatpush1.msra.mxu0 %v34_v7  ;;  %249 = vmatpush1.msra.mxu1 %v206_v8  ;;  %v31_v13 = vld [vmem:[%s1023_s1 + $0x8] sm:$0xff]  ;;  %v203_v14 = vld [vmem:[%s1023_s1 + $0x18] sm:$0xff]  ;;  %v30_v15 = vld [vmem:[%s1023_s1] sm:$0xff] }
   0x6   :  { %85 = vmatprep.subr.mxu0 %v33_v9  ;;  %250 = vmatprep.subr.mxu1 %v205_v10  ;;  %v202_v16 = vld [vmem:[%s1023_s1 + $0x10] sm:$0xff] }
   0x7   :  { %86 = vmatpush1.msra.mxu0 %v32_v11  ;;  %251 = vmatpush1.msra.mxu1 %v204_v12 }
   0x8   :  { %10 = vsyncpa [#allocation4], 0  ;;  %87 = vmatprep.subr.mxu0 %v31_v13  ;;  %252 = vmatprep.subr.mxu1 %v203_v14  ;;  %v28_v17 = vld [vmem:[%s1022_s0] sm:$0xff]  ;;  %v29_v18 = vld [vmem:[%s1022_s0 + $0x8] sm:$0xff]  ;;  %s679_s26 = smov [#allocation3]  }
   0x9   :  { %88 = vmatpush1.msra.mxu0 %v30_v15  ;;  %121 = vmatprep.mubr.f32.mxu0 %v678_v6  ;;  %v366_v19 = vld [vmem:[%s1025_s3 + $0x1f8] sm:$0xff]  ;;  %v365_v23 = vld [vmem:[%s1025_s3 + $0x1f0] sm:$0xff]  ;;  %v364_v27 = vld [vmem:[%s1025_s3 + $0x1e8] sm:$0xff]  ;;  %s544_s27 = sshll.u32 %s679_s26, 4  ;;  %s545_s27 = int_to_ptr.vmem [resolvable:$true] %s544_s27 }
   0xa   :  { %253 = vmatpush1.msra.mxu1 %v202_v16  ;;  %286 = vmatprep.mubr.f32.mxu1 %v678_v6  ;;  %v201_v20 = vld [vmem:[%s1025_s3 + $0xf8] sm:$0xff]  ;;  %v200_v24 = vld [vmem:[%s1025_s3 + $0xf0] sm:$0xff]  ;;  %v199_v28 = vld [vmem:[%s1025_s3 + $0xe8] sm:$0xff]  ;;  %s656_s28 = scalar_lea.vmem %s545_s27, 256  ;;  %p661_p1 = scmp.lt.s32.totalorder %s545_s27, %s545_s27 }
   0xb   :  { %555 = vmatmul.mubr.msk.f32.vlgmr.msra.gmra.mxu0 %vm25_vm0, %v28_v17  ;;  %557 = vmatmul.mubr.msk.f32.vlgmr.msra.gmra.mxu1 %vm25_vm0, %v28_v17  ;;  %v350_v21 = vld [vmem:[%s1025_s3 + $0x178] sm:$0xff]  ;;  %v349_v25 = vld [vmem:[%s1025_s3 + $0x170] sm:$0xff]  ;;  %v348_v29 = vld [vmem:[%s1025_s3 + $0x168] sm:$0xff]  ;;  %p657_p0 = scmp.ne.s32.totalorder %s545_s27, %s656_s28  ;;  %p662_p2 = scmp.lt.s32.totalorder %s656_s28, %s656_s28 }
   0xc   :  { %127 = vmatprep.mubr.f32.mxu0 %v678_v6  ;;  %292 = vmatprep.mubr.f32.mxu1 %v678_v6  ;;  %v185_v22 = vld [vmem:[%s1025_s3 + $0x78] sm:$0xff]  ;;  %v184_v26 = vld [vmem:[%s1025_s3 + $0x70] sm:$0xff]  ;;  %v183_v30 = vld [vmem:[%s1025_s3 + $0x68] sm:$0xff] }
   0xd   :  { %560 = vmatprep.subr.mxu0 %v366_v19  ;;  %598 = vmatprep.subr.mxu1 %v201_v20  ;;  %v363_v31 = vld [vmem:[%s1025_s3 + $0x1e0] sm:$0xff]  ;;  %v362_v35 = vld [vmem:[%s1025_s3 + $0x1d8] sm:$0xff]  ;;  %v361_v39 = vld [vmem:[%s1025_s3 + $0x1d0] sm:$0xff]  ;;  %v40_v19 = vlaneseq  ;;  %p663_p3 = por %p662_p2, %p661_p1 }
   0xe   :  { %561 = vmatpush3.msra.mxu0 %v350_v21  ;;  %599 = vmatpush3.msra.mxu1 %v185_v22  ;;  %v198_v32 = vld [vmem:[%s1025_s3 + $0xe0] sm:$0xff]  ;;  %v197_v36 = vld [vmem:[%s1025_s3 + $0xd8] sm:$0xff]  ;;  %v196_v40 = vld [vmem:[%s1025_s3 + $0xd0] sm:$0xff] }
   0xf   :  { %556 = vmatmul.mubr.msk.f32.gmra.mxu0 %vm25_vm0, %v29_v18  ;;  %558 = vmatmul.mubr.msk.f32.gmra.mxu1 %vm25_vm0, %v29_v18  ;;  %v347_v33 = vld [vmem:[%s1025_s3 + $0x160] sm:$0xff]  ;;  %v346_v37 = vld [vmem:[%s1025_s3 + $0x158] sm:$0xff]  ;;  %v345_v41 = vld [vmem:[%s1025_s3 + $0x150] sm:$0xff]  ;;  %v41_v20 = vshrl.u32 %v40_v19, 7  ;;  %p664_p4 = pnand %p663_p3, %p657_p0 }
  0x10   :  { %562 = vmatprep.subr.mxu0 %v365_v23  ;;  %600 = vmatprep.subr.mxu1 %v200_v24  ;;  %v182_v34 = vld [vmem:[%s1025_s3 + $0x60] sm:$0xff]  ;;  %v181_v38 = vld [vmem:[%s1025_s3 + $0x58] sm:$0xff]  ;;  %v180_v42 = vld [vmem:[%s1025_s3 + $0x50] sm:$0xff] }
  0x11   :  { %563 = vmatpush3.msra.mxu0 %v349_v25  ;;  %601 = vmatpush3.msra.mxu1 %v184_v26  ;;  %v360_v43 = vld [vmem:[%s1025_s3 + $0x1c8] sm:$0xff]  ;;  %v359_v47 = vld [vmem:[%s1025_s3 + $0x1c0] sm:$0xff]  ;;  %v358_v51 = vld [vmem:[%s1025_s3 + $0x1b8] sm:$0xff]  ;;  %v42_v21 = vsub.s32 0, %v41_v20  ;;  %v46_v24 = vsub.s32 1, %v41_v20 }
  0x12   :  { %564 = vmatprep.subr.mxu0 %v364_v27  ;;  %602 = vmatprep.subr.mxu1 %v199_v28  ;;  %v195_v44 = vld [vmem:[%s1025_s3 + $0xc8] sm:$0xff]  ;;  %v194_v48 = vld [vmem:[%s1025_s3 + $0xc0] sm:$0xff]  ;;  %v193_v52 = vld [vmem:[%s1025_s3 + $0xb8] sm:$0xff] }
  0x13   :  { %565 = vmatpush3.msra.mxu0 %v348_v29  ;;  %603 = vmatpush3.msra.mxu1 %v183_v30  ;;  %v344_v45 = vld [vmem:[%s1025_s3 + $0x148] sm:$0xff]  ;;  %v343_v49 = vld [vmem:[%s1025_s3 + $0x140] sm:$0xff]  ;;  %v342_v53 = vld [vmem:[%s1025_s3 + $0x138] sm:$0xff] }
  0x14   :  { %566 = vmatprep.subr.mxu0 %v363_v31  ;;  %604 = vmatprep.subr.mxu1 %v198_v32  ;;  %v179_v46 = vld [vmem:[%s1025_s3 + $0x48] sm:$0xff]  ;;  %v178_v50 = vld [vmem:[%s1025_s3 + $0x40] sm:$0xff]  ;;  %v177_v54 = vld [vmem:[%s1025_s3 + $0x38] sm:$0xff] }
  0x15   :  { %567 = vmatpush3.msra.mxu0 %v347_v33  ;;  %605 = vmatpush3.msra.mxu1 %v182_v34  ;;  %v357_v55 = vld [vmem:[%s1025_s3 + $0x1b0] sm:$0xff]  ;;  %v356_v59 = vld [vmem:[%s1025_s3 + $0x1a8] sm:$0xff]  ;;  %v355_v63 = vld [vmem:[%s1025_s3 + $0x1a0] sm:$0xff] }
  0x16   :  { %568 = vmatprep.subr.mxu0 %v362_v35  ;;  %606 = vmatprep.subr.mxu1 %v197_v36  ;;  %v192_v56 = vld [vmem:[%s1025_s3 + $0xb0] sm:$0xff]  ;;  %v191_v60 = vld [vmem:[%s1025_s3 + $0xa8] sm:$0xff]  ;;  %v190_v0 = vld [vmem:[%s1025_s3 + $0xa0] sm:$0xff] }
  0x17   :  { %569 = vmatpush3.msra.mxu0 %v346_v37  ;;  %607 = vmatpush3.msra.mxu1 %v181_v38  ;;  %v341_v57 = vld [vmem:[%s1025_s3 + $0x130] sm:$0xff]  ;;  %v340_v61 = vld [vmem:[%s1025_s3 + $0x128] sm:$0xff]  ;;  %v339_v1 = vld [vmem:[%s1025_s3 + $0x120] sm:$0xff] }
  0x18   :  { %570 = vmatprep.subr.mxu0 %v361_v39  ;;  %608 = vmatprep.subr.mxu1 %v196_v40  ;;  %v176_v58 = vld [vmem:[%s1025_s3 + $0x30] sm:$0xff]  ;;  %v175_v62 = vld [vmem:[%s1025_s3 + $0x28] sm:$0xff]  ;;  %v174_v2 = vld [vmem:[%s1025_s3 + $0x20] sm:$0xff] }
  0x19   :  { %571 = vmatpush3.msra.mxu0 %v345_v41  ;;  %609 = vmatpush3.msra.mxu1 %v180_v42  ;;  %v354_v3 = vld [vmem:[%s1025_s3 + $0x198] sm:$0xff]  ;;  %v353_v7 = vld [vmem:[%s1025_s3 + $0x190] sm:$0xff]  ;;  %v352_v11 = vld [vmem:[%s1025_s3 + $0x188] sm:$0xff] }
  0x1a   :  { %572 = vmatprep.subr.mxu0 %v360_v43  ;;  %610 = vmatprep.subr.mxu1 %v195_v44  ;;  %v189_v4 = vld [vmem:[%s1025_s3 + $0x98] sm:$0xff]  ;;  %v188_v8 = vld [vmem:[%s1025_s3 + $0x90] sm:$0xff]  ;;  %v187_v12 = vld [vmem:[%s1025_s3 + $0x88] sm:$0xff] }
  0x1b   :  { %573 = vmatpush3.msra.mxu0 %v344_v45  ;;  %611 = vmatpush3.msra.mxu1 %v179_v46  ;;  %v338_v5 = vld [vmem:[%s1025_s3 + $0x118] sm:$0xff]  ;;  %v337_v9 = vld [vmem:[%s1025_s3 + $0x110] sm:$0xff]  ;;  %v336_v13 = vld [vmem:[%s1025_s3 + $0x108] sm:$0xff] }
  0x1c   :  { %574 = vmatprep.subr.mxu0 %v359_v47  ;;  %612 = vmatprep.subr.mxu1 %v194_v48  ;;  %v173_v6 = vld [vmem:[%s1025_s3 + $0x18] sm:$0xff]  ;;  %v172_v10 = vld [vmem:[%s1025_s3 + $0x10] sm:$0xff]  ;;  %v171_v14 = vld [vmem:[%s1025_s3 + $0x8] sm:$0xff] }
  0x1d   :  { %575 = vmatpush3.msra.mxu0 %v343_v49  ;;  %613 = vmatpush3.msra.mxu1 %v178_v50  ;;  %v351_v15 = vld [vmem:[%s1025_s3 + $0x180] sm:$0xff] }
  0x1e   :  { %576 = vmatprep.subr.mxu0 %v358_v51  ;;  %614 = vmatprep.subr.mxu1 %v193_v52  ;;  %v186_v16 = vld [vmem:[%s1025_s3 + $0x80] sm:$0xff] }
  0x1f   :  { %577 = vmatpush3.msra.mxu0 %v342_v53  ;;  %615 = vmatpush3.msra.mxu1 %v177_v54  ;;  %v335_v17 = vld [vmem:[%s1025_s3 + $0x100] sm:$0xff] }
  0x20   :  { %578 = vmatprep.subr.mxu0 %v357_v55  ;;  %616 = vmatprep.subr.mxu1 %v192_v56  ;;  %v170_v18 = vld [vmem:[%s1025_s3] sm:$0xff] }
  0x21   :  { %579 = vmatpush3.msra.mxu0 %v341_v57  ;;  %617 = vmatpush3.msra.mxu1 %v176_v58  ;;  %v38_v22 = vld [vmem:[%s1024_s2] sm:$0x3]  ;;  %v210_v23 = vld [vmem:[%s1024_s2 + $0x2] sm:$0x3] }
  0x22   :  { %580 = vmatprep.subr.mxu0 %v356_v59  ;;  %618 = vmatprep.subr.mxu1 %v191_v60  ;;  %v43_v25 = vrot.slane %v38_v22, %v42_v21  ;;  %v215_v26 = vrot.slane %v210_v23, %v42_v21  ;;  %v47_v29 = vrot.slane %v38_v22, %v46_v24 }
  0x23   :  { %581 = vmatpush3.msra.mxu0 %v340_v61  ;;  %619 = vmatpush3.msra.mxu1 %v175_v62  ;;  %v219_v30 = vrot.slane %v210_v23, %v46_v24 }
  0x24   :  { %582 = vmatprep.subr.mxu0 %v355_v63  ;;  %620 = vmatprep.subr.mxu1 %v190_v0 }
  0x25   :  { %583 = vmatpush3.msra.mxu0 %v339_v1  ;;  %621 = vmatpush3.msra.mxu1 %v174_v2 }
  0x26   :  { %584 = vmatprep.subr.mxu0 %v354_v3  ;;  %622 = vmatprep.subr.mxu1 %v189_v4 }
  0x27   :  { %585 = vmatpush3.msra.mxu0 %v338_v5  ;;  %623 = vmatpush3.msra.mxu1 %v173_v6 }
  0x28   :  { %586 = vmatprep.subr.mxu0 %v353_v7  ;;  %624 = vmatprep.subr.mxu1 %v188_v8 }
  0x29   :  { %587 = vmatpush3.msra.mxu0 %v337_v9  ;;  %625 = vmatpush3.msra.mxu1 %v172_v10 }
  0x2a   :  { %588 = vmatprep.subr.mxu0 %v352_v11  ;;  %626 = vmatprep.subr.mxu1 %v187_v12 }
  0x2b   :  { %589 = vmatpush3.msra.mxu0 %v336_v13  ;;  %627 = vmatpush3.msra.mxu1 %v171_v14 }
  0x2c   :  { %590 = vmatprep.subr.mxu0 %v351_v15  ;;  %628 = vmatprep.subr.mxu1 %v186_v16 }
  0x2d   :  { %591 = vmatpush3.msra.mxu0 %v335_v17  ;;  %629 = vmatpush3.msra.mxu1 %v170_v18 }
  0xcb   :  { %v123_v27 = vpop.f32.mrf.mxu0  ;;  %v288_v28 = vpop.f32.mrf.mxu1 }
  0xcc   :  { %v970_v31 = vadd.f32 %v123_v27, %v43_v25  ;;  %v972_v32 = vadd.f32 %v288_v28, %v215_v26 }
  0xcd   :  { %v125_v33 = vpop.f32.mrf.mxu0  ;;  %v290_v34 = vpop.f32.mrf.mxu1 }
  0xce   :  { %v138_v35 = vmul.f32 0.044715, %v970_v31  ;;  %v303_v36 = vmul.f32 0.044715, %v972_v32  ;;  %v976_v37 = vadd.f32 %v125_v33, %v47_v29  ;;  %v291_v38 = vadd.f32 %v290_v34, %v219_v30 }
  0xcf   :  { %v129_v39 = vpop.f32.mrf.mxu0  ;;  %v294_v40 = vpop.f32.mrf.mxu1 }
  0xd0   :  { %v142_v41 = vmul.f32 %v138_v35, %v970_v31  ;;  %v307_v42 = vmul.f32 %v303_v36, %v972_v32  ;;  %v980_v43 = vadd.f32 %v129_v39, %v43_v25  ;;  %v982_v44 = vadd.f32 %v294_v40, %v215_v26 }
  0xd1   :  { %v139_v45 = vmul.f32 0.044715, %v976_v37  ;;  %v304_v46 = vmul.f32 0.044715, %v291_v38  ;;  %v131_v47 = vpop.f32.mrf.mxu0  ;;  %v296_v48 = vpop.f32.mrf.mxu1  ;;  %v300_v26 = vmul.f32 0.5, %v291_v38  ;;  %v134_v35 = vmul.f32 0.5, %v970_v31 }
  0xd2   :  { %v146_v49 = vmul.f32 %v142_v41, %v970_v31  ;;  %v311_v50 = vmul.f32 %v307_v42, %v972_v32  ;;  %v140_v51 = vmul.f32 0.044715, %v980_v43  ;;  %v305_v52 = vmul.f32 0.044715, %v982_v44 }
  0xd3   :  { %v143_v53 = vmul.f32 %v139_v45, %v976_v37  ;;  %v308_v54 = vmul.f32 %v304_v46, %v291_v38  ;;  %v990_v55 = vadd.f32 %v131_v47, %v47_v29  ;;  %v297_v56 = vadd.f32 %v296_v48, %v219_v30 }
  0xd4   :  { %v150_v57 = vadd.f32 %v146_v49, %v970_v31  ;;  %v315_v58 = vadd.f32 %v311_v50, %v972_v32  ;;  %v309_v59 = vmul.f32 %v305_v52, %v982_v44  ;;  %v144_v2 = vmul.f32 %v140_v51, %v980_v43 }
  0xd5   :  { %v141_v60 = vmul.f32 0.044715, %v990_v55  ;;  %v306_v61 = vmul.f32 0.044715, %v297_v56  ;;  %v312_v62 = vmul.f32 %v308_v54, %v291_v38  ;;  %v147_v63 = vmul.f32 %v143_v53, %v976_v37 }
  0xd6   :  { %v154_v0 = vmul.f32 0.7978846, %v150_v57  ;;  %v319_v1 = vmul.f32 0.7978846, %v315_v58  ;;  %v313_v7 = vmul.f32 %v309_v59, %v982_v44  ;;  %v148_v13 = vmul.f32 %v144_v2, %v980_v43 }
  0xd7   :  { %v145_v3 = vmul.f32 %v141_v60, %v990_v55  ;;  %v310_v4 = vmul.f32 %v306_v61, %v297_v56  ;;  %v316_v5 = vadd.f32 %v312_v62, %v291_v38  ;;  %v151_v6 = vadd.f32 %v147_v63, %v976_v37 }
  0xd8   :  { %640 = vtanh.f32 %v154_v0  ;;  %v317_v12 = vadd.f32 %v313_v7, %v982_v44  ;;  %v152_v17 = vadd.f32 %v148_v13, %v980_v43  ;;  %v299_v29 = vmul.f32 0.5, %v972_v32  ;;  %v559_v7 = vld [vmem:[%s1026_s4] ss:$0 sm:$0xff] }
  0xd9   :  { %642 = vtanh.f32 %v319_v1  ;;  %v320_v8 = vmul.f32 0.7978846, %v316_v5  ;;  %v155_v9 = vmul.f32 0.7978846, %v151_v6  ;;  %v314_v10 = vmul.f32 %v310_v4, %v297_v56  ;;  %v518_v4 = vld [vmem:[#allocation2 + $0x8] sm:$0xff] }
  0xda   :  { %v149_v11 = vmul.f32 %v145_v3, %v990_v55  ;;  %v321_v16 = vmul.f32 0.7978846, %v317_v12  ;;  %v156_v20 = vmul.f32 0.7978846, %v152_v17  ;;  %v135_v30 = vmul.f32 0.5, %v976_v37 }
  0xdb   :  { %644 = vtanh.f32 %v320_v8  ;;  %v318_v14 = vadd.f32 %v314_v10, %v297_v56  ;;  %v302_v47 = vmul.f32 0.5, %v297_v56  ;;  %v137_v32 = vmul.f32 0.5, %v990_v55 }
  0xdc   :  { %646 = vtanh.f32 %v155_v9  ;;  %v153_v15 = vadd.f32 %v149_v11, %v990_v55  ;;  %v301_v49 = vmul.f32 0.5, %v982_v44  ;;  %v136_v50 = vmul.f32 0.5, %v980_v43  ;;  %v517_v44 = vld [vmem:[#allocation2] sm:$0xff] }
  0xdd   :  { %v322_v18 = vmul.f32 0.7978846, %v318_v14  ;;  %648 = vtanh.f32 %v321_v16 }
  0xde   :  { %v157_v19 = vmul.f32 0.7978846, %v153_v15 }
  0xdf   :  { %650 = vtanh.f32 %v322_v18 }
  0xe0   :  { %652 = vtanh.f32 %v157_v19 }
  0xe1   :  { %654 = vtanh.f32 %v156_v20 }
  0xe5   :  { %v641_v21 = vpop.eup %640 }
  0xe6   :  { %v643_v22 = vpop.eup %642  ;;  %v162_v28 = vadd.f32 1.0, %v641_v21 }
  0xe7   :  { %v327_v24 = vadd.f32 1.0, %v643_v22 }
  0xe8   :  { %v645_v23 = vpop.eup %644  ;;  %v166_v46 = vmul.f32 %v162_v28, %v134_v35 }
  0xe9   :  { %v647_v25 = vpop.eup %646  ;;  %v328_v27 = vadd.f32 1.0, %v645_v23  ;;  %v331_v41 = vmul.f32 %v327_v24, %v299_v29 }
  0xea   :  { %v163_v33 = vadd.f32 1.0, %v647_v25  ;;  %v649_v34 = vpop.eup %648 }
  0xeb   :  { %v332_v36 = vmul.f32 %v328_v27, %v300_v26  ;;  %v329_v42 = vadd.f32 1.0, %v649_v34 }
  0xec   :  { %v651_v39 = vpop.eup %650  ;;  %v167_v40 = vmul.f32 %v163_v33, %v135_v30 }
  0xed   :  { %v653_v45 = vpop.eup %652  ;;  %431 = vmatprep.mubr.f32.mxu0 %v332_v36  ;;  %v330_v38 = vadd.f32 1.0, %v651_v39  ;;  %v333_v53 = vmul.f32 %v329_v42, %v301_v49 }
  0xee   :  { %v655_v48 = vpop.eup %654  ;;  %506 = vmatprep.mubr.f32.mxu1 %v167_v40  ;;  %432 = vmatmul.mubr.f32.vlgmr.msra.gmra.mxu0 %v331_v41  ;;  %v165_v37 = vadd.f32 1.0, %v653_v45 }
  0xef   :  { %507 = vmatmul.mubr.f32.vlgmr.msra.gmra.mxu1 %v166_v46  ;;  %v334_v31 = vmul.f32 %v330_v38, %v302_v47  ;;  %v164_v51 = vadd.f32 1.0, %v655_v48 }
  0xf0   :  { %v169_v52 = vmul.f32 %v165_v37, %v137_v32 }
  0xf1   :  { %436 = vmatprep.mubr.f32.mxu0 %v334_v31  ;;  %v168_v54 = vmul.f32 %v164_v51, %v136_v50 }
  0xf2   :  { %511 = vmatprep.mubr.f32.mxu1 %v169_v52  ;;  %437 = vmatmul.mubr.f32.gmra.mxu0 %v333_v53 }
  0xf3   :  { %512 = vmatmul.mubr.f32.gmra.mxu1 %v168_v54 }
 0x1ae   :  { %v592_v56 = vpop.f32.mrf.mxu0 }
 0x1af   :  { %v630_v57 = vpop.f32.mrf.mxu1 }
 0x1b0   :  { %v593_v58 = vpop.f32.mrf.mxu0 }
 0x1b1   :  { %v594_v59 = vadd.f32 %v593_v58, %v592_v56  ;;  %v631_v55 = vpop.f32.mrf.mxu1 }
 0x1b2   :  { %v632_v60 = vadd.f32 %v631_v55, %v630_v57  ;;  %v595_v61 = vpop.f32.mrf.mxu0 }
 0x1b3   :  { %v633_v62 = vpop.f32.mrf.mxu1 }
 0x1b4   :  { %v509_v63 = vadd.f32 %v632_v60, %v594_v59  ;;  %v596_v0 = vpop.f32.mrf.mxu0 }
 0x1b5   :  { %v597_v43 = vadd.f32 %v596_v0, %v595_v61  ;;  %v634_v1 = vpop.f32.mrf.mxu1 }
 0x1b6   :  { %v519_v2 = vadd.f32 %v517_v44, %v509_v63  ;;  %v635_v3 = vadd.f32 %v634_v1, %v633_v62 }
 0x1b8   :  { %521 = vst.msk [vmem:[#allocation2] sm:$0xff] %vm25_vm0, %v519_v2  ;;  %v514_v5 = vadd.f32 %v635_v3, %v597_v43 }
 0x1ba   :  { %v520_v6 = vadd.f32 %v518_v4, %v514_v5 }
 0x1bc   :  { %522 = vst.msk [vmem:[#allocation2 + $0x8] sm:$0xff] %vm25_vm0, %v520_v6 }
 0x1bf   :  { %v526_v8 = vld [vmem:[#allocation2] sm:$0xff] }
 0x1c0   :  { %v535_v9 = vadd.f32 %v559_v7, %v526_v8 }
 0x1c2   :  { %537 = vst.msk [vmem:[#allocation3] sm:$0xff] %vm25_vm0, %v535_v9 }
 0x1c3   :  { %v527_v10 = vld [vmem:[#allocation2 + $0x8] sm:$0xff] }
 0x1c4   :  { %v536_v11 = vadd.f32 %v559_v7, %v527_v10 }
 0x1c6   :  { %538 = vst.msk [vmem:[#allocation3 + $0x8] sm:$0xff] %vm25_vm0, %v536_v11 }
 0x1c7   :  { %667 = shalt.err (!%p664_p4)
}
 0x1c8   :  { %s680_s1 = smov 128   ;;  %s681_s4 = smov 8  }
 0x1c9   :  { %550 = dma.vmem_to_hbm [thread:$0]  %s545_s27, 256, %s1027_s5, [#allocation4], %s680_s1, %s680_s1, %s681_s4  }
 0x1ca   :  { %676 = dma.done.wait [#allocation4], 256  }
 0x1cb   :  { %677 = vsyncadd [#allocation4], 4294967040 }
 0x1cc   :  { %554 = vsyncpa [#allocation4], 1 }

</bundles_post_ra>
